<compile_context>
chip_gen: v5e
topology: v5e:2x2
jax: 0.10.0
libtpu: 0.0.40
codegen_flags: <defaults>
</compile_context>

<pallas_src>
import functools

import jax
import jax.numpy as jnp
from jax import lax
from jax.experimental import pallas as pl
from jax.experimental.pallas import tpu as pltpu


# ----------------------------- Pallas kernel -------------------------------

def rmsnorm_kernel(x_ref, scale_ref, o_ref, *, eps):
    # x_ref: (TM, D) row tile (f32 or bf16); scale_ref: (1, D) f32; o_ref: (TM, D)
    x = x_ref[...].astype(jnp.float32)                # f32 accumulation
    ms = jnp.mean(x * x, axis=-1, keepdims=True)      # per-row mean of squares
    inv_rms = lax.rsqrt(ms + eps)                     # EUP rsqrt: no sqrt+divide
    o_ref[...] = ((x * inv_rms) * scale_ref[...]).astype(o_ref.dtype)


# ------------------------------ JAX wrapper ---------------------------------

def _round_up(n, m):
    return ((n + m - 1) // m) * m


def rmsnorm(x, scale, eps=1e-6):
    """RMSNorm over the last axis.  x: (..., d) f32/bf16, scale: (d,) f32."""
    orig_shape = x.shape
    d = orig_shape[-1]
    x2d = x.reshape(-1, d)
    n = x2d.shape[0]

    itemsize = jnp.dtype(x.dtype).itemsize
    sublane = max(8, 32 // itemsize)                  # 8 for f32, 16 for bf16

    # Row-tile sizing: ~2 MiB per input block -> 2x in + 2x out double-buffered
    # tiles stay under v5e's 16 MiB default scoped-VMEM limit with headroom.
    target_bytes = 2 * 1024 * 1024
    tm = max(sublane,
             (target_bytes // max(d * itemsize, 1)) // sublane * sublane)
    # Keep >= 2 grid steps when possible so ("parallel",) uses both v7x TCs.
    half_rows = max(sublane, _round_up(pl.cdiv(n, 2), sublane))
    tm = min(tm, half_rows, _round_up(n, sublane))

    grid = (pl.cdiv(n, tm),)                          # boundary block is masked

    cost = pl.CostEstimate(
        flops=4 * n * d,
        transcendentals=n,
        bytes_accessed=2 * n * d * itemsize + d * 4,
    )

    out = pl.pallas_call(
        functools.partial(rmsnorm_kernel, eps=eps),
        out_shape=jax.ShapeDtypeStruct((n, d), x.dtype),
        grid=grid,
        in_specs=[
            pl.BlockSpec((tm, d), lambda i: (i, 0)),  # pipelined row tiles
            pl.BlockSpec((1, d), lambda i: (0, 0)),   # scale stays resident
        ],
        out_specs=pl.BlockSpec((tm, d), lambda i: (i, 0)),
        compiler_params=pltpu.CompilerParams(
            dimension_semantics=("parallel",)),       # rows across TCs
        cost_estimate=cost,
    )(x2d, scale.reshape(1, d).astype(jnp.float32))

    return out.reshape(orig_shape)


# --------------------------------- driver -----------------------------------

if __name__ == "__main__":
    B, S, D_MODEL = 2, 8, 4096      # d_model matches the reference module
    key = jax.random.PRNGKey(0)
    kx, ks = jax.random.split(key)

    x = jax.random.normal(kx, (B, S, D_MODEL), jnp.float32)
    # scale is a learnable parameter (init ones in the module); use a
    # non-trivial value so the elementwise scale path is actually exercised.
    scale = 1.0 + 0.01 * jax.random.normal(ks, (D_MODEL,), jnp.float32)

    out = rmsnorm(x, scale, eps=1e-6)
    jax.block_until_ready(out)

    # Pure-JAX reference mirroring the PyTorch forward exactly.
    rms = jnp.sqrt(jnp.mean(x * x, axis=-1, keepdims=True) + 1e-6)
    ref = scale * (x / rms)

    assert out.shape == x.shape and out.dtype == jnp.float32
    assert bool(jnp.allclose(out, ref, atol=1e-4, rtol=1e-4)), float(
        jnp.max(jnp.abs(out - ref)))
    print("KERNEL_OK")
</pallas_src>

<mosaic_0001>
module attributes {stable_mosaic.version = 11 : i64} {
  func.func @rmsnorm_kernel(%arg0: i32, %arg1: memref<8x4096xf32, #tpu.memory_space<vmem>>, %arg2: memref<1x4096xf32, #tpu.memory_space<vmem>>, %arg3: memref<8x4096xf32, #tpu.memory_space<vmem>>) attributes {dimension_semantics = [#tpu.dimension_semantics<parallel>], iteration_bounds = array<i64: 2>, scalar_prefetch = 0 : i64, scratch_operands = 0 : i64, tpu.core_type = #tpu.core_type<tc>, window_params = [{transform_indices = @transform_0, window_bounds = array<i64: 8, 4096>}, {pipeline_mode = #tpu.pipeline_mode<synchronous>, transform_indices = @transform_1, window_bounds = array<i64: 1, 4096>}, {transform_indices = @transform_2, window_bounds = array<i64: 8, 4096>}]} {
    %c0 = arith.constant 0 : index
    %c0_0 = arith.constant 0 : index
    %0 = vector.load %arg1[%c0, %c0_0] : memref<8x4096xf32, #tpu.memory_space<vmem>>, vector<8x4096xf32>
    %1 = arith.mulf %0, %0 : vector<8x4096xf32>
    %cst = arith.constant dense<0.000000e+00> : vector<8xf32>
    %2 = vector.multi_reduction <add>, %1, %cst [1] : vector<8x4096xf32> to vector<8xf32>
    %3 = vector.shape_cast %2 : vector<8xf32> to vector<8x1xf32>
    %cst_1 = arith.constant 4.096000e+03 : f32
    %4 = vector.broadcast %cst_1 : f32 to vector<8x1xf32>
    %5 = arith.divf %3, %4 : vector<8x1xf32>
    %cst_2 = arith.constant 9.99999997E-7 : f32
    %6 = vector.broadcast %cst_2 : f32 to vector<8x1xf32>
    %7 = arith.addf %5, %6 : vector<8x1xf32>
    %8 = math.rsqrt %7 : vector<8x1xf32>
    %9 = vector.broadcast %8 : vector<8x1xf32> to vector<8x4096xf32>
    %10 = arith.mulf %0, %9 : vector<8x4096xf32>
    %c0_3 = arith.constant 0 : index
    %c0_4 = arith.constant 0 : index
    %11 = vector.load %arg2[%c0_3, %c0_4] : memref<1x4096xf32, #tpu.memory_space<vmem>>, vector<1x4096xf32>
    %12 = vector.broadcast %11 : vector<1x4096xf32> to vector<8x4096xf32>
    %13 = arith.mulf %10, %12 : vector<8x4096xf32>
    %c0_5 = arith.constant 0 : index
    %c0_6 = arith.constant 0 : index
    %14 = vector.load %arg3[%c0_5, %c0_6] : memref<8x4096xf32, #tpu.memory_space<vmem>>, vector<8x4096xf32>
    tpu.vector_store %arg3[%c0_5, %c0_6], %13 {strides = array<i32>} : memref<8x4096xf32, #tpu.memory_space<vmem>>, vector<8x4096xf32>,
    return
  }
  func.func @transform_0(%arg0: i32) -> (i32, i32) {
    %c0_i32 = arith.constant 0 : i32
    %c0_i32_0 = arith.constant 0 : i32
    return %arg0, %c0_i32 : i32, i32
  }
  func.func @transform_1(%arg0: i32) -> (i32, i32) {
    %c0_i32 = arith.constant 0 : i32
    %c0_i32_0 = arith.constant 0 : i32
    %c0_i32_1 = arith.constant 0 : i32
    return %c0_i32, %c0_i32_0 : i32, i32
  }
  func.func @transform_2(%arg0: i32) -> (i32, i32) {
    %c0_i32 = arith.constant 0 : i32
    %c0_i32_0 = arith.constant 0 : i32
    return %arg0, %c0_i32 : i32, i32
  }
}

</mosaic_0001>

<bundles_post_ra>
// kernel: tpu_custom_call.1
= control target key start
LH: loop header
LB: loop body
LE: loop exit
PB: predicated region body
PF: predicated region fallthrough
CT: control target
= control target key end

     0   :  { %7 = vsyncpa [#allocation3], 0  ;;  %s1192_s0 = inlined_call_operand.hbm [shape: f32[16,4096], index: 0, kind: input, shape index: {}]   ;;  %s1193_s1 = inlined_call_operand.hbm [shape: f32[1,4096], index: 1, kind: input, shape index: {}]   ;;  %s1194_s2 = inlined_call_operand.hbm [shape: f32[16,4096], index: 2, kind: output, shape index: {}]  }
   0x1   :  { %9 = vsyncpa [#allocation3 + $0x1], 0 }
   0x2   :  { %10 = vsyncpa [#allocation6], 0 }
   0x3   :  { %11 = vsyncpa [#allocation4], 0 }
   0x4   :  { %13 = vsyncpa [#allocation4 + $0x1], 0  ;;  %s787_s9 = smov 0   ;;  %s789_s10 = smov 0  }
   0x5   :  { %s791_s11 = smov 0   ;;  %s793_s12 = smov 0  }
   0x6 LB: > { %s808_s13 = sadd.s32 4294967295, %s768_s12   ;;  %s558_s14 = sadd.s32 4294967294, %s768_s12   ;;  %s768_s12 = sphi %s793_s12, %s1204_s12   ;;  %s764_s11 = sphi %s791_s11, %s1203_s11   ;;  %s760_s10 = sphi %s789_s10, %s1202_s10   ;;  %s756_s9 = sphi %s787_s9, %s1201_s9  }
   0x7   : > { %p39_p0 = scmp.ne.s32.totalorder %s760_s10, %s756_s9  ;;  %p40_p1 = scmp.eq.s32.totalorder %s808_s13, 0 }
   0x8   : > { %p84_p2 = scmp.eq.s32.totalorder %s808_s13, 1  ;;  %p90_p3 = scmp.eq.s32.totalorder %s558_s14, 1 }
   0x9   : > { %p817_p4 = por %p40_p1, %p39_p0  ;;  %p559_p5 = scmp.ge.s32.totalorder %s768_s12, 1 }
   0xa   : > { %p822_p6 = por %p90_p3, %p39_p0  ;;  %p97_p7 = scmp.lt.s32.totalorder %s768_s12, 3 }
   0xb   : > { %s109_s19 = sshll.u32 %s1193_s1, 4  ;;  %s770_s21 = smov [#allocation5]   ;;  %s110_s19 = int_to_ptr.hbm [resolvable:$true] %s109_s19 }
   0xc   : > { %p830_p8 = pnand %p559_p5, %p97_p7  ;;  %s111_s22 = sshll.u32 %s770_s21, 4  ;;  %s112_s22 = int_to_ptr.vmem [resolvable:$true] %s111_s22 }
   0xd   : > { %s840_s23 = sadd.s32 1, %s768_s12   ;;  %s26_s24 = sadd.s32 1, %s764_s11 }
   0xe   : > { %p584_p10 = pneg %p830_p8  ;;  %s23_s25 = ssub.s32 %s768_s12, %s840_s23 }
   0xf   : > { %p24_p12 = scmp.eq.s32.totalorder %s23_s25, 0  ;;  %p33_p13 = scmp.ne.s32.totalorder %s764_s11, %s760_s10 }
  0x10   : > { %p585_p11 = pnand %p584_p10, %p40_p1  ;;  %p34_p0 = scmp.eq.s32.totalorder %s768_s12, 0 }
  0x11   : > { %s849_s26 = scalar_select %p24_p12, %s764_s11, %s26_s24  }
  0x12   : > { %587 = dma.hbm_to_vmem [thread:$0]  (!%p585_p11), %s110_s19, 512, %s112_s22, [#allocation6]  }
  0x13   : > { %p853_p3 = por %p84_p2, %p33_p13  ;;  %p597_p5 = scmp.lt.s32.totalorder %s768_s12, 2 }
  0x14   : > { %s122_s28 = sand.u32 1, %s764_s11   ;;  %s574_s29 = sshll.u32 %s768_s12, 8 }
  0x15   : > { %p35_p7 = por %p34_p0, %p33_p13  ;;  %s562_s30 = sshll.u32 %s122_s28, 8 }
  0x16   : > { %s131_s5 = scalar_lea.hbm %s1192_s0, %s574_s29  ;;  %s126_s7 = scalar_lea.vmem [#allocation2], %s562_s30 }
  0x17   : > { %s133_s6 = sshll.u32 %s131_s5, 4  ;;  %s135_s8 = sshll.u32 %s126_s7, 4  ;;  %s134_s6 = int_to_ptr.hbm [resolvable:$true] %s133_s6  ;;  %s136_s8 = int_to_ptr.vmem [resolvable:$true] %s135_s8 }
  0x18   : > { %p863_p10 = pnand %p597_p5, %p35_p7  ;;  %s123_s17 = scalar_lea.sflag [#allocation3], %s122_s28 }
  0x19   : > { %s668_s18 = sshra.s32 %s134_s6, 4  ;;  %s675_s24 = scalar_lea.hbm %s1192_s0, 512  ;;  %s669_s18 = int_to_ptr.hbm [resolvable:$true] %s668_s18 }
  0x1a   : > { %s670_s19 = scalar_lea.hbm %s669_s18, 256  ;;  %p672_p11 = pneg %p863_p10 }
  0x1b   : > { %p671_p2 = scmp.ne.s32.totalorder %s669_s18, %s670_s19  ;;  %p676_p0 = scmp.lt.s32.totalorder %s669_s18, %s1192_s0 }
  0x1c   : > { %p677_p5 = scmp.lt.s32.totalorder %s675_s24, %s670_s19 }
  0x1d   : > { %p673_p12 = pnand %p672_p11, %p671_p2 }
  0x1e   : > { %p678_p7 = por %p677_p5, %p676_p0 }
  0x1f   : > { %p674_p13 = pneg %p673_p12 }
  0x21   : > { %p679_p9 = pnand %p678_p7, %p674_p13 }
  0x23   : > { %682 = shalt.err (!%p679_p9)
}
  0x24   : > { %591 = dma.hbm_to_vmem [thread:$0]  (!%p863_p10), %s134_s6, 4096, %s136_s8, %s123_s17  }
  0x25   : > { %144 = sbr.rel (%p830_p8) target bundleno = 286 (0x11e), region = 28  ;;  %s880_s28 = sand.u32 (!%p830_p8), 1, %s760_s10  }
  0x26   : > { %s566_s30 = sshll.u32 (!%p830_p8), %s880_s28, 8  ;;  %s147_s3 = scalar_lea.sflag (!%p830_p8), [#allocation3], %s880_s28 }
  0x27   : > { %s886_s4 = scalar_lea.vmem (!%p830_p8), [#allocation2], %s566_s30 }
  0x2a   : > { %743 = dma.done.wait (%p817_p4), %s147_s3, 4096  }
  0x2b   : > { %745 = vsyncadd (%p817_p4), %s147_s3, 4294963200 }
  0x2c   : > { %747 = dma.done.wait (%p40_p1), [#allocation6], 512  }
  0x2d   : > { %749 = vsyncadd (%p40_p1), [#allocation6], 4294966784  ;;  %v897_v0 = vld [vmem:[%s886_s4] sm:$0xff]  ;;  %v900_v1 = vld [vmem:[%s886_s4 + $0x8] sm:$0xff]  ;;  %s1078_s15 = scalar_lea.vmem [#allocation7], %s566_s30  ;;  %s575_s20 = sshll.u32 %s808_s13, 8 }
  0x2e   : > { %v903_v2 = vld [vmem:[%s886_s4 + $0x10] sm:$0xff]  ;;  %v906_v3 = vld [vmem:[%s886_s4 + $0x18] sm:$0xff]  ;;  %v209_v4 = vmul.f32 %v897_v0, %v897_v0  ;;  %v210_v5 = vmul.f32 %v900_v1, %v900_v1  ;;  %v915_v7 = vld [vmem:[%s886_s4 + $0x20] sm:$0xff]  ;;  %s473_s6 = scalar_lea.hbm %s1194_s2, %s575_s20  ;;  %s475_s7 = sshll.u32 %s1078_s15, 4  ;;  %s476_s7 = int_to_ptr.vmem [resolvable:$true] %s475_s7 }
  0x2f   : > { %v211_v6 = vmul.f32 %v903_v2, %v903_v2  ;;  %v212_v8 = vmul.f32 %v906_v3, %v906_v3  ;;  %v920_v10 = vld [vmem:[%s886_s4 + $0x28] sm:$0xff]  ;;  %v213_v11 = vmul.f32 %v915_v7, %v915_v7  ;;  %v925_v13 = vld [vmem:[%s886_s4 + $0x30] sm:$0xff]  ;;  %v930_v16 = vld [vmem:[%s886_s4 + $0x38] sm:$0xff]  ;;  %s477_s8 = sshll.u32 %s473_s6, 4  ;;  %s462_s14 = scalar_lea.sflag [#allocation4], %s880_s28  ;;  %s478_s8 = int_to_ptr.hbm [resolvable:$true] %s477_s8 }
  0x30   : > { %v241_v9 = vadd.f32 %v210_v5, %v209_v4  ;;  %v214_v14 = vmul.f32 %v920_v10, %v920_v10  ;;  %v215_v17 = vmul.f32 %v925_v13, %v925_v13  ;;  %v935_v19 = vld [vmem:[%s886_s4 + $0x40] sm:$0xff]  ;;  %v216_v20 = vmul.f32 %v930_v16, %v930_v16  ;;  %v940_v22 = vld [vmem:[%s886_s4 + $0x48] sm:$0xff]  ;;  %v945_v25 = vld [vmem:[%s886_s4 + $0x50] sm:$0xff]  ;;  %s712_s17 = sshra.s32 %s478_s8, 4  ;;  %s718_s22 = scalar_lea.hbm %s1194_s2, 512  ;;  %s713_s17 = int_to_ptr.hbm [resolvable:$true] %s712_s17 }
  0x31   : > { %v217_v23 = vmul.f32 %v935_v19, %v935_v19  ;;  %v218_v26 = vmul.f32 %v940_v22, %v940_v22  ;;  %v950_v28 = vld [vmem:[%s886_s4 + $0x58] sm:$0xff]  ;;  %v219_v29 = vmul.f32 %v945_v25, %v945_v25  ;;  %v955_v31 = vld [vmem:[%s886_s4 + $0x60] sm:$0xff]  ;;  %v960_v34 = vld [vmem:[%s886_s4 + $0x68] sm:$0xff]  ;;  %s714_s18 = scalar_lea.hbm %s713_s17, 256  ;;  %p719_p9 = scmp.lt.s32.totalorder %s713_s17, %s1194_s2 }
  0x32   : > { %v242_v12 = vadd.f32 %v241_v9, %v211_v6  ;;  %v220_v32 = vmul.f32 %v950_v28, %v950_v28  ;;  %v221_v35 = vmul.f32 %v955_v31, %v955_v31  ;;  %v965_v37 = vld [vmem:[%s886_s4 + $0x70] sm:$0xff]  ;;  %v222_v38 = vmul.f32 %v960_v34, %v960_v34  ;;  %v970_v40 = vld [vmem:[%s886_s4 + $0x78] sm:$0xff]  ;;  %v975_v43 = vld [vmem:[%s886_s4 + $0x80] sm:$0xff]  ;;  %p715_p1 = scmp.ne.s32.totalorder %s713_s17, %s714_s18  ;;  %p720_p10 = scmp.lt.s32.totalorder %s718_s22, %s714_s18 }
  0x33   : > { %v223_v41 = vmul.f32 %v965_v37, %v965_v37  ;;  %v224_v44 = vmul.f32 %v970_v40, %v970_v40  ;;  %v980_v46 = vld [vmem:[%s886_s4 + $0x88] sm:$0xff]  ;;  %v225_v47 = vmul.f32 %v975_v43, %v975_v43  ;;  %v985_v49 = vld [vmem:[%s886_s4 + $0x90] sm:$0xff]  ;;  %v990_v52 = vld [vmem:[%s886_s4 + $0x98] sm:$0xff] }
  0x34   : > { %v243_v15 = vadd.f32 %v242_v12, %v212_v8  ;;  %v226_v50 = vmul.f32 %v980_v46, %v980_v46  ;;  %v227_v53 = vmul.f32 %v985_v49, %v985_v49  ;;  %v995_v55 = vld [vmem:[%s886_s4 + $0xa0] sm:$0xff]  ;;  %v228_v56 = vmul.f32 %v990_v52, %v990_v52  ;;  %v1000_v58 = vld [vmem:[%s886_s4 + $0xa8] sm:$0xff]  ;;  %v1005_v61 = vld [vmem:[%s886_s4 + $0xb0] sm:$0xff]  ;;  %p716_p4 = pnand %p715_p1, %p853_p3  ;;  %p721_p2 = por %p720_p10, %p719_p9 }
  0x35   : > { %v229_v59 = vmul.f32 %v995_v55, %v995_v55  ;;  %v230_v62 = vmul.f32 %v1000_v58, %v1000_v58  ;;  %v1010_v4 = vld [vmem:[%s886_s4 + $0xb8] sm:$0xff]  ;;  %v231_v5 = vmul.f32 %v1005_v61, %v1005_v61  ;;  %v1015_v8 = vld [vmem:[%s886_s4 + $0xc0] sm:$0xff]  ;;  %v1020_v12 = vld [vmem:[%s886_s4 + $0xc8] sm:$0xff] }
  0x36   : > { %v244_v18 = vadd.f32 %v243_v15, %v213_v11  ;;  %v232_v9 = vmul.f32 %v1010_v4, %v1010_v4  ;;  %p717_p8 = pneg %p716_p4 }
  0x38   : > { %v245_v21 = vadd.f32 %v244_v18, %v214_v14  ;;  %v233_v14 = vmul.f32 %v1015_v8, %v1015_v8  ;;  %v234_v18 = vmul.f32 %v1020_v12, %v1020_v12  ;;  %p722_p11 = pnand %p721_p2, %p717_p8 }
  0x3a   : > { %v246_v24 = vadd.f32 %v245_v21, %v215_v17  ;;  %v1025_v17 = vld [vmem:[%s886_s4 + $0xd0] sm:$0xff]  ;;  %v1030_v21 = vld [vmem:[%s886_s4 + $0xd8] sm:$0xff] }
  0x3c   : > { %v247_v27 = vadd.f32 %v246_v24, %v216_v20 }
  0x3e   : > { %v248_v30 = vadd.f32 %v247_v27, %v217_v23  ;;  %v235_v23 = vmul.f32 %v1025_v17, %v1025_v17  ;;  %v236_v27 = vmul.f32 %v1030_v21, %v1030_v21 }
  0x40   : > { %v249_v33 = vadd.f32 %v248_v30, %v218_v26  ;;  %v1035_v26 = vld [vmem:[%s886_s4 + $0xe0] sm:$0xff]  ;;  %v1040_v30 = vld [vmem:[%s886_s4 + $0xe8] sm:$0xff] }
  0x42   : > { %v250_v36 = vadd.f32 %v249_v33, %v219_v29 }
  0x44   : > { %v251_v39 = vadd.f32 %v250_v36, %v220_v32  ;;  %v237_v32 = vmul.f32 %v1035_v26, %v1035_v26  ;;  %v238_v36 = vmul.f32 %v1040_v30, %v1040_v30 }
  0x46   : > { %v252_v42 = vadd.f32 %v251_v39, %v221_v35  ;;  %v1045_v35 = vld [vmem:[%s886_s4 + $0xf0] sm:$0xff]  ;;  %v1050_v39 = vld [vmem:[%s886_s4 + $0xf8] sm:$0xff] }
  0x48   : > { %v253_v45 = vadd.f32 %v252_v42, %v222_v38 }
  0x4a   : > { %v254_v48 = vadd.f32 %v253_v45, %v223_v41  ;;  %v239_v41 = vmul.f32 %v1045_v35, %v1045_v35 }
  0x4c   : > { %v255_v51 = vadd.f32 %v254_v48, %v224_v44  ;;  %v240_v44 = vmul.f32 %v1050_v39, %v1050_v39 }
  0x4e   : > { %v256_v54 = vadd.f32 %v255_v51, %v225_v47 }
  0x50   : > { %v257_v57 = vadd.f32 %v256_v54, %v226_v50  ;;  %v771_v50 = vmov 4096.0  }
  0x51   : > { %634 = vrcp.f32 %v771_v50 }
  0x52   : > { %v258_v60 = vadd.f32 %v257_v57, %v227_v53 }
  0x54   : > { %v259_v63 = vadd.f32 %v258_v60, %v228_v56 }
  0x56   : > { %v260_v6 = vadd.f32 %v259_v63, %v229_v59 }
  0x57   : > { %v635_v51 = vpop.eup %634 }
  0x58   : > { %v261_v11 = vadd.f32 %v260_v6, %v230_v62  ;;  %v275_v53 = vmul.f32 4096.0, %v635_v51  ;;  %vm279_vm0 = vweird.f32 %v635_v51 }
  0x5a   : > { %v262_v15 = vadd.f32 %v261_v11, %v231_v5  ;;  %v276_v54 = vsub.f32 1.0, %v275_v53 }
  0x5c   : > { %v263_v20 = vadd.f32 %v262_v15, %v232_v9  ;;  %v277_v56 = vmul.f32 %v635_v51, %v276_v54 }
  0x5e   : > { %v264_v24 = vadd.f32 %v263_v20, %v233_v14  ;;  %v278_v57 = vadd.f32 %v635_v51, %v277_v56 }
  0x60   : > { %v265_v29 = vadd.f32 %v264_v24, %v234_v18  ;;  %v280_v59 = vsel %vm279_vm0, %v635_v51, %v278_v57  ;;  %v325_v18 = vld [vmem:[#allocation5] sm:$0xff] }
  0x61   : > { %v334_v24 = vperm.slane %v325_v18, 1  ;;  %v340_v51 = vperm.slane %v325_v18, 7 }
  0x62   : > { %v266_v33 = vadd.f32 %v265_v29, %v235_v23  ;;  %v333_v23 = vperm.slane %v325_v18, 0 }
  0x64   : > { %v267_v38 = vadd.f32 %v266_v33, %v236_v27  ;;  %v335_v33 = vperm.slane %v325_v18, 2 }
  0x66   : > { %v268_v42 = vadd.f32 %v267_v38, %v237_v32  ;;  %v336_v38 = vperm.slane %v325_v18, 3 }
  0x68   : > { %v269_v45 = vadd.f32 %v268_v42, %v238_v36  ;;  %v337_v42 = vperm.slane %v325_v18, 4 }
  0x6a   : > { %v270_v47 = vadd.f32 %v269_v45, %v239_v41  ;;  %v338_v45 = vperm.slane %v325_v18, 5 }
  0x6c   : > { %v271_v48 = vadd.f32 %v270_v47, %v240_v44  ;;  %v339_v47 = vperm.slane %v325_v18, 6 }
  0x6e   : > { %272 = vadd.xlane.f32.xlu0 %v271_v48 }
  0xe1   : > { %v273_v60 = vpop.xlane.xlu0 %272 }
  0xe2   : > { %v281_v62 = vmul.f32 %v280_v59, %v273_v60 }
  0xe4   : > { %v282_v63 = vadd.f32 1e-06, %v281_v62 }
  0xe6   : > { %636 = vrsqrt.f32 %v282_v63  ;;  %vm289_vm2 = vweird.f32 %v282_v63 }
  0xec   : > { %v637_v5 = vpop.eup %636 }
  0xed   : > { %v284_v6 = vmul.f32 %v637_v5, %v282_v63  ;;  %vm290_vm1 = vweird.f32 %v637_v5 }
  0xee   : > { %vm291_vm3 = vmor %vm289_vm2, %vm290_vm1 }
  0xef   : > { %v285_v9 = vmul.f32 %v637_v5, %v284_v6 }
  0xf1   : > { %v286_v11 = vmul.f32 0.5, %v285_v9  ;;  %v327_v9 = vld [vmem:[#allocation5 + $0x10] sm:$0xff] }
  0xf3   : > { %v287_v14 = vsub.f32 1.5, %v286_v11 }
  0xf5   : > { %v288_v15 = vmul.f32 %v637_v5, %v287_v14 }
  0xf7   : > { %v1056_v20 = vsel %vm291_vm3, %v637_v5, %v288_v15 }
  0xf8   : > { %v293_v27 = vmul.f32 %v1056_v20, %v897_v0  ;;  %v294_v29 = vmul.f32 %v1056_v20, %v900_v1  ;;  %v295_v32 = vmul.f32 %v1056_v20, %v903_v2  ;;  %v296_v36 = vmul.f32 %v1056_v20, %v906_v3  ;;  %v326_v0 = vld [vmem:[#allocation5 + $0x8] sm:$0xff] }
  0xf9   : > { %v297_v41 = vmul.f32 %v1056_v20, %v915_v7  ;;  %v298_v44 = vmul.f32 %v1056_v20, %v920_v10  ;;  %v299_v1 = vmul.f32 %v1056_v20, %v925_v13  ;;  %v300_v3 = vmul.f32 %v1056_v20, %v930_v16 }
  0xfa   : > { %v397_v2 = vmul.f32 %v333_v23, %v293_v27  ;;  %v398_v48 = vmul.f32 %v334_v24, %v294_v29  ;;  %v399_v50 = vmul.f32 %v335_v33, %v295_v32  ;;  %v400_v53 = vmul.f32 %v336_v38, %v296_v36 }
  0xfb   : > { %v301_v7 = vmul.f32 %v1056_v20, %v935_v19  ;;  %v341_v54 = vperm.slane %v326_v0, 0  ;;  %v401_v56 = vmul.f32 %v337_v42, %v297_v41  ;;  %v302_v10 = vmul.f32 %v1056_v20, %v940_v22 }
  0xfc   : > { %429 = vst [vmem:[%s1078_s15] sm:$0xff] %v397_v2  ;;  %v342_v13 = vperm.slane %v326_v0, 1  ;;  %v402_v16 = vmul.f32 %v338_v45, %v298_v44  ;;  %v303_v19 = vmul.f32 %v1056_v20, %v945_v25  ;;  %v343_v57 = vperm.slane %v326_v0, 2  ;;  %v328_v45 = vld [vmem:[#allocation5 + $0x18] sm:$0xff] }
  0xfd   : > { %430 = vst [vmem:[%s1078_s15 + $0x8] sm:$0xff] %v398_v48  ;;  %v403_v59 = vmul.f32 %v339_v47, %v299_v1  ;;  %v304_v60 = vmul.f32 %v1056_v20, %v950_v28  ;;  %v344_v62 = vperm.slane %v326_v0, 3  ;;  %v404_v63 = vmul.f32 %v340_v51, %v300_v3 }
  0xfe   : > { %431 = vst [vmem:[%s1078_s15 + $0x10] sm:$0xff] %v399_v50  ;;  %v305_v22 = vmul.f32 %v1056_v20, %v955_v31  ;;  %v345_v5 = vperm.slane %v326_v0, 4  ;;  %v405_v6 = vmul.f32 %v341_v54, %v301_v7  ;;  %v306_v25 = vmul.f32 %v1056_v20, %v960_v34 }
  0xff   : > { %432 = vst [vmem:[%s1078_s15 + $0x18] sm:$0xff] %v400_v53  ;;  %v346_v11 = vperm.slane %v326_v0, 5  ;;  %v406_v14 = vmul.f32 %v342_v13, %v302_v10  ;;  %v307_v28 = vmul.f32 %v1056_v20, %v965_v37  ;;  %v347_v15 = vperm.slane %v326_v0, 6 }
 0x100   : > { %433 = vst [vmem:[%s1078_s15 + $0x20] sm:$0xff] %v401_v56  ;;  %v407_v18 = vmul.f32 %v343_v57, %v303_v19  ;;  %v308_v31 = vmul.f32 %v1056_v20, %v970_v40  ;;  %v348_v23 = vperm.slane %v326_v0, 7  ;;  %v408_v24 = vmul.f32 %v344_v62, %v304_v60 }
 0x101   : > { %434 = vst [vmem:[%s1078_s15 + $0x28] sm:$0xff] %v402_v16  ;;  %v309_v34 = vmul.f32 %v1056_v20, %v975_v43  ;;  %v349_v27 = vperm.slane %v327_v9, 0  ;;  %v409_v29 = vmul.f32 %v345_v5, %v305_v22  ;;  %v310_v37 = vmul.f32 %v1056_v20, %v980_v46 }
 0x102   : > { %435 = vst [vmem:[%s1078_s15 + $0x30] sm:$0xff] %v403_v59  ;;  %v350_v32 = vperm.slane %v327_v9, 1  ;;  %v410_v33 = vmul.f32 %v346_v11, %v306_v25  ;;  %v311_v40 = vmul.f32 %v1056_v20, %v985_v49  ;;  %v351_v36 = vperm.slane %v327_v9, 2 }
 0x103   : > { %436 = vst [vmem:[%s1078_s15 + $0x38] sm:$0xff] %v404_v63  ;;  %v411_v38 = vmul.f32 %v347_v15, %v307_v28  ;;  %v312_v43 = vmul.f32 %v1056_v20, %v990_v52  ;;  %v352_v41 = vperm.slane %v327_v9, 3  ;;  %v412_v42 = vmul.f32 %v348_v23, %v308_v31 }
 0x104   : > { %437 = vst [vmem:[%s1078_s15 + $0x40] sm:$0xff] %v405_v6  ;;  %v313_v46 = vmul.f32 %v1056_v20, %v995_v55  ;;  %v353_v44 = vperm.slane %v327_v9, 4  ;;  %v413_v0 = vmul.f32 %v349_v27, %v309_v34  ;;  %v314_v49 = vmul.f32 %v1056_v20, %v1000_v58 }
 0x105   : > { %438 = vst [vmem:[%s1078_s15 + $0x48] sm:$0xff] %v406_v14  ;;  %v354_v47 = vperm.slane %v327_v9, 5  ;;  %v414_v1 = vmul.f32 %v350_v32, %v310_v37  ;;  %v315_v52 = vmul.f32 %v1056_v20, %v1005_v61  ;;  %v355_v2 = vperm.slane %v327_v9, 6 }
 0x106   : > { %439 = vst [vmem:[%s1078_s15 + $0x50] sm:$0xff] %v407_v18  ;;  %v415_v48 = vmul.f32 %v351_v36, %v311_v40  ;;  %v316_v55 = vmul.f32 %v1056_v20, %v1010_v4  ;;  %v356_v50 = vperm.slane %v327_v9, 7  ;;  %v416_v3 = vmul.f32 %v352_v41, %v312_v43 }
 0x107   : > { %440 = vst [vmem:[%s1078_s15 + $0x58] sm:$0xff] %v408_v24  ;;  %v317_v58 = vmul.f32 %v1056_v20, %v1015_v8  ;;  %v357_v51 = vperm.slane %v328_v45, 0  ;;  %v417_v53 = vmul.f32 %v353_v44, %v313_v46  ;;  %v318_v61 = vmul.f32 %v1056_v20, %v1020_v12 }
 0x108   : > { %441 = vst [vmem:[%s1078_s15 + $0x60] sm:$0xff] %v409_v29  ;;  %v358_v7 = vperm.slane %v328_v45, 1  ;;  %v418_v54 = vmul.f32 %v354_v47, %v314_v49  ;;  %v319_v4 = vmul.f32 %v1056_v20, %v1025_v17  ;;  %v359_v56 = vperm.slane %v328_v45, 2 }
 0x109   : > { %442 = vst [vmem:[%s1078_s15 + $0x68] sm:$0xff] %v410_v33  ;;  %v419_v10 = vmul.f32 %v355_v2, %v315_v52  ;;  %v320_v8 = vmul.f32 %v1056_v20, %v1030_v21  ;;  %v360_v13 = vperm.slane %v328_v45, 3  ;;  %v420_v16 = vmul.f32 %v356_v50, %v316_v55 }
 0x10a   : > { %443 = vst [vmem:[%s1078_s15 + $0x70] sm:$0xff] %v411_v38  ;;  %v321_v12 = vmul.f32 %v1056_v20, %v1035_v26  ;;  %v361_v19 = vperm.slane %v328_v45, 4  ;;  %v421_v57 = vmul.f32 %v357_v51, %v317_v58  ;;  %v322_v17 = vmul.f32 %v1056_v20, %v1040_v30 }
 0x10b   : > { %444 = vst [vmem:[%s1078_s15 + $0x78] sm:$0xff] %v412_v42  ;;  %v362_v59 = vperm.slane %v328_v45, 5  ;;  %v422_v60 = vmul.f32 %v358_v7, %v318_v61  ;;  %v323_v21 = vmul.f32 %v1056_v20, %v1045_v35  ;;  %v363_v62 = vperm.slane %v328_v45, 6 }
 0x10c   : > { %445 = vst [vmem:[%s1078_s15 + $0x80] sm:$0xff] %v413_v0  ;;  %v423_v26 = vmul.f32 %v359_v56, %v319_v4  ;;  %v324_v63 = vmul.f32 %v1056_v20, %v1050_v39  ;;  %v364_v22 = vperm.slane %v328_v45, 7  ;;  %v424_v30 = vmul.f32 %v360_v13, %v320_v8 }
 0x10d   : > { %446 = vst [vmem:[%s1078_s15 + $0x88] sm:$0xff] %v414_v1  ;;  %v425_v5 = vmul.f32 %v361_v19, %v321_v12  ;;  %v426_v35 = vmul.f32 %v362_v59, %v322_v17  ;;  %v427_v6 = vmul.f32 %v363_v62, %v323_v21 }
 0x10e   : > { %447 = vst [vmem:[%s1078_s15 + $0x90] sm:$0xff] %v415_v48  ;;  %v428_v39 = vmul.f32 %v364_v22, %v324_v63 }
 0x10f   : > { %448 = vst [vmem:[%s1078_s15 + $0x98] sm:$0xff] %v416_v3 }
 0x110   : > { %449 = vst [vmem:[%s1078_s15 + $0xa0] sm:$0xff] %v417_v53 }
 0x111   : > { %450 = vst [vmem:[%s1078_s15 + $0xa8] sm:$0xff] %v418_v54 }
 0x112   : > { %451 = vst [vmem:[%s1078_s15 + $0xb0] sm:$0xff] %v419_v10 }
 0x113   : > { %452 = vst [vmem:[%s1078_s15 + $0xb8] sm:$0xff] %v420_v16 }
 0x114   : > { %453 = vst [vmem:[%s1078_s15 + $0xc0] sm:$0xff] %v421_v57 }
 0x115   : > { %454 = vst [vmem:[%s1078_s15 + $0xc8] sm:$0xff] %v422_v60 }
 0x116   : > { %455 = vst [vmem:[%s1078_s15 + $0xd0] sm:$0xff] %v423_v26 }
 0x117   : > { %456 = vst [vmem:[%s1078_s15 + $0xd8] sm:$0xff] %v424_v30 }
 0x118   : > { %457 = vst [vmem:[%s1078_s15 + $0xe0] sm:$0xff] %v425_v5 }
 0x119   : > { %458 = vst [vmem:[%s1078_s15 + $0xe8] sm:$0xff] %v426_v35 }
 0x11a   : > { %459 = vst [vmem:[%s1078_s15 + $0xf0] sm:$0xff] %v427_v6 }
 0x11b   : > { %460 = vst [vmem:[%s1078_s15 + $0xf8] sm:$0xff] %v428_v39 }
 0x11c   : > { %725 = shalt.err (!%p722_p11)
}
 0x11d   : > { %582 = dma.vmem_to_hbm [thread:$0]  (%p853_p3), %s476_s7, 4096, %s478_s8, %s462_s14  }
 0x11e PF: > { %s489_s29 = sand.u32 1, %s756_s9   ;;  %p1200_p12 = scmp.ge.s32.totalorder %s768_s12, 2 }
 0x11f   : > { %s490_s28 = scalar_lea.sflag [#allocation4], %s489_s29 }
 0x120   : > { %p593_p13 = pnand %p1200_p12, %p822_p6 }
 0x122   : > { %p594_p0 = pneg %p593_p13 }
 0x124   : > { %751 = dma.done.wait (%p594_p0), %s490_s28, 4096  }
 0x125   : > { %753 = vsyncadd (%p594_p0), %s490_s28, 4294963200  ;;  %p16_p5 = scmp.ge.s32.totalorder %s840_s23, 4   ;;  %s1201_s9 = smov %s760_s10 }
 0x126   : > { %s1202_s10 = smov %s764_s11  ;;  %s1203_s11 = smov %s849_s26 }
 0x127   : > { %s1204_s12 = smov %s840_s23  ;;  %18 = sbr.rel (!%p16_p5) target bundleno = 6 (0x6), region = 77 }
 0x12c   :  { %496 = vsyncpa [#allocation3], 1 }
 0x12d   :  { %498 = vsyncpa [#allocation3 + $0x1], 1 }
 0x12e   :  { %499 = vsyncpa [#allocation6], 1 }
 0x12f   :  { %500 = vsyncpa [#allocation4], 1 }
 0x130   :  { %502 = vsyncpa [#allocation4 + $0x1], 1 }

</bundles_post_ra>
